<compile_context>
chip_gen: v7x
topology: tpu7x:2x2x1
jax: 0.10.0
libtpu: 0.0.40
codegen_flags: <defaults>
</compile_context>

<pallas_src>
import jax
import jax.numpy as jnp
from jax.experimental import pallas as pl
from jax.experimental.pallas import tpu as pltpu


def _pointconv_mxu_kernel(x_ref, w_ref, o_ref):
    # x_ref: (C_in, bhw), w_ref: (C_out, C_in), o_ref: (C_out, bhw)
    o_ref[...] = jnp.dot(
        w_ref[...], x_ref[...], preferred_element_type=jnp.float32
    ).astype(o_ref.dtype)


def _pointconv_vpu_kernel(x_ref, w_ref, o_ref):
    # Tiny-K path: static unrolled broadcast-FMA on the VPU.
    # Avoids paying MXU push/pop for a 4-8 deep contraction; kernel stays
    # load/store-bound, which is where this memory-bound op should be.
    x = x_ref[...].astype(jnp.float32)   # (C_in, bhw)
    w = w_ref[...].astype(jnp.float32)   # (C_out, C_in)
    c_in = x.shape[0]
    acc = w[:, 0:1] * x[0:1, :]          # (C_out, bhw) outer-product term
    for c in range(1, c_in):             # static unroll (c_in is a Python int)
        acc = acc + w[:, c:c + 1] * x[c:c + 1, :]
    o_ref[...] = acc.astype(o_ref.dtype)


def dynamic_point_conv2d(x, weight, out_channel=None, *, kernel_size=1, stride=1,
                         dilation=1, block_hw=2048, mxu_min_in_channels=32,
                         vmem_budget_bytes=24 * 1024 * 1024, compute_dtype=None):
    """Forward of DynamicPointConv2d.

    x:      (N, C_in, H, W)   -- C_in may be <= max_in_channels
    weight: (max_out, max_in, k, k)
    """
    if kernel_size != 1:
        # TODO(synk): kernel_size > 1 path (im2col) not implemented; module is pointwise (1x1) by design.
        raise NotImplementedError("Only kernel_size=1 (pointwise) is supported.")

    N, C_in, H, W = x.shape
    if out_channel is None:
        out_channel = weight.shape[0]
    C_out = out_channel
    out_dtype = x.dtype

    # Dynamic slicing of the weight (matches `self.conv.weight[:out_channel, :in_channel]`).
    # Kept as (C_out, C_in): no transpose needed for the (C_out,C_in)@(C_in,HW) layout.
    w = weight[:C_out, :C_in, 0, 0]

    # get_same_padding(1) == 0, so stride just subsamples the spatial grid for a 1x1 conv.
    if stride > 1:
        # TODO(synk): fuse the stride subsample into the BlockSpec index_map / pl.ds(..., stride=)
        # instead of materializing the sliced tensor in HBM (only matters when stride>1).
        x = x[:, :, ::stride, ::stride]
    _, _, Ho, Wo = x.shape
    HW = Ho * Wo

    # NCHW -> (N, C_in, HW): a pure reshape, no data movement.
    x_flat = x.reshape(N, C_in, HW)

    if compute_dtype is not None:
        # Optional bf16 (etc.) compute path: halves HBM read traffic; accumulation
        # stays f32 inside the kernel. Off by default to preserve f32 reference accuracy.
        x_flat = x_flat.astype(compute_dtype)
        w = w.astype(compute_dtype)

    itemsize = jnp.dtype(x_flat.dtype).itemsize
    out_itemsize = jnp.dtype(out_dtype).itemsize

    # Spatial (lane-axis) tile: as large as possible under a VMEM budget that is
    # conservative for v7x (64 MiB physical / 32 MiB default scoped). BlockSpec
    # double-buffers x, w and the output tile.
    w_bytes = 2 * C_in * C_out * itemsize
    per_col_bytes = 2 * (C_in * itemsize + C_out * out_itemsize)
    avail = max(vmem_budget_bytes - w_bytes, per_col_bytes * 128)
    max_bhw = max(128, (avail // per_col_bytes) // 128 * 128)
    bhw = min(block_hw, max_bhw)          # multiple of 128
    if HW <= bhw:
        bhw = HW                          # full spatial extent: always a legal block dim
    # else: bhw is a multiple of 128 (lane-dense); trailing partial block is masked.

    grid = (N, pl.cdiv(HW, bhw))

    kernel = (_pointconv_vpu_kernel if C_in < mxu_min_in_channels
              else _pointconv_mxu_kernel)

    flops = 2 * N * HW * C_in * C_out
    bytes_accessed = (N * HW * C_in * itemsize
                      + C_in * C_out * itemsize
                      + N * HW * C_out * out_itemsize)

    out = pl.pallas_call(
        kernel,
        out_shape=jax.ShapeDtypeStruct((N, C_out, HW), out_dtype),
        grid_spec=pl.GridSpec(
            grid=grid,
            in_specs=[
                # x tile: batch dim squeezed, channels on sublanes, spatial on lanes.
                pl.BlockSpec((None, C_in, bhw), lambda n, s: (n, 0, s)),
                # Weight: grid-invariant (Pallas keeps it resident; re-DMA is elided).
                pl.BlockSpec((C_out, C_in), lambda n, s: (0, 0)),
            ],
            out_specs=pl.BlockSpec((None, C_out, bhw), lambda n, s: (n, 0, s)),
        ),
        compiler_params=pltpu.CompilerParams(
            dimension_semantics=("parallel", "parallel"),
        ),
        cost_estimate=pl.CostEstimate(
            flops=flops, transcendentals=0, bytes_accessed=bytes_accessed),
    )(x_flat, w)

    # (N, C_out, HW) -> NCHW: pure reshape, no transpose.
    return out.reshape(N, C_out, Ho, Wo)


if __name__ == "__main__":
    key = jax.random.PRNGKey(0)
    kx, kw, kx2, kw2 = jax.random.split(key, 4)

    # ---- Config 1: module-sized test (VPU tiny-K path) ----
    max_in_channels = 8
    max_out_channels = 8
    kernel_size = 1
    N, C_in, H, W = 2, 4, 16, 16
    out_channel = 6

    x = jax.random.normal(kx, (N, C_in, H, W), dtype=jnp.float32)
    fan_in = max_in_channels * kernel_size * kernel_size
    bound = (6.0 / fan_in) ** 0.5
    weight = jax.random.uniform(
        kw, (max_out_channels, max_in_channels, kernel_size, kernel_size),
        dtype=jnp.float32, minval=-bound, maxval=bound,
    )

    y = dynamic_point_conv2d(x, weight, out_channel=out_channel,
                             kernel_size=kernel_size, stride=1, dilation=1)
    y = jax.block_until_ready(y)

    w_ref = weight[:out_channel, :C_in, 0, 0]
    y_ref = jnp.einsum("nchw,oc->nohw", x, w_ref)
    assert y.shape == (N, out_channel, H, W), y.shape
    assert jnp.allclose(y, y_ref, atol=1e-5, rtol=1e-5), "mismatch vs reference (cfg1)"

    # ---- Config 1b: stride=2 path ----
    y_s2 = dynamic_point_conv2d(x, weight, out_channel=out_channel,
                                kernel_size=kernel_size, stride=2, dilation=1)
    y_s2 = jax.block_until_ready(y_s2)
    y_s2_ref = jnp.einsum("nchw,oc->nohw", x[:, :, ::2, ::2], w_ref)
    assert y_s2.shape == y_s2_ref.shape, y_s2.shape
    assert jnp.allclose(y_s2, y_s2_ref, atol=1e-5, rtol=1e-5), "mismatch vs reference (stride=2)"

    # ---- Config 2: larger channels (MXU path) ----
    N2, C_in2, H2, W2, C_out2 = 2, 64, 16, 16, 128
    x2 = jax.random.normal(kx2, (N2, C_in2, H2, W2), dtype=jnp.float32)
    weight2 = jax.random.uniform(
        kw2, (C_out2, C_in2, 1, 1), dtype=jnp.float32, minval=-0.1, maxval=0.1)
    y2 = dynamic_point_conv2d(x2, weight2, out_channel=C_out2)
    y2 = jax.block_until_ready(y2)
    y2_ref = jnp.einsum("nchw,oc->nohw", x2, weight2[:, :, 0, 0])
    assert y2.shape == (N2, C_out2, H2, W2), y2.shape
    assert jnp.allclose(y2, y2_ref, atol=1e-4, rtol=1e-4), "mismatch vs reference (cfg2)"

    print("KERNEL_OK")
</pallas_src>

<mosaic_0001>
module attributes {stable_mosaic.version = 11 : i64} {
  func.func @_pointconv_vpu_kernel(%arg0: i32, %arg1: i32, %arg2: memref<1x4x256xf32, #tpu.memory_space<vmem>>, %arg3: memref<6x4xf32, #tpu.memory_space<vmem>>, %arg4: memref<1x6x256xf32, #tpu.memory_space<vmem>>) attributes {dimension_semantics = [#tpu.dimension_semantics<parallel>, #tpu.dimension_semantics<parallel>], iteration_bounds = array<i64: 2, 1>, scalar_prefetch = 0 : i64, scratch_operands = 0 : i64, tpu.core_type = #tpu.core_type<tc>, window_params = [{transform_indices = @transform_0, window_bounds = array<i64: 1, 4, 256>}, {pipeline_mode = #tpu.pipeline_mode<synchronous>, transform_indices = @transform_1, window_bounds = array<i64: 6, 4>}, {transform_indices = @transform_2, window_bounds = array<i64: 1, 6, 256>}]} {
    %c0 = arith.constant 0 : index
    %c0_0 = arith.constant 0 : index
    %c0_1 = arith.constant 0 : index
    %0 = vector.load %arg2[%c0, %c0_0, %c0_1] : memref<1x4x256xf32, #tpu.memory_space<vmem>>, vector<1x4x256xf32>
    %1 = vector.shape_cast %0 : vector<1x4x256xf32> to vector<4x256xf32>
    %c0_2 = arith.constant 0 : index
    %c0_3 = arith.constant 0 : index
    %2 = vector.load %arg3[%c0_2, %c0_3] : memref<6x4xf32, #tpu.memory_space<vmem>>, vector<6x4xf32>
    %3 = vector.extract_strided_slice %2 {offsets = [0, 0], sizes = [6, 1], strides = [1, 1]} : vector<6x4xf32> to vector<6x1xf32>
    %4 = vector.extract_strided_slice %1 {offsets = [0, 0], sizes = [1, 256], strides = [1, 1]} : vector<4x256xf32> to vector<1x256xf32>
    %5 = vector.broadcast %3 : vector<6x1xf32> to vector<6x256xf32>
    %6 = vector.broadcast %4 : vector<1x256xf32> to vector<6x256xf32>
    %7 = arith.mulf %5, %6 : vector<6x256xf32>
    %8 = vector.extract_strided_slice %2 {offsets = [0, 1], sizes = [6, 1], strides = [1, 1]} : vector<6x4xf32> to vector<6x1xf32>
    %9 = vector.extract_strided_slice %1 {offsets = [1, 0], sizes = [1, 256], strides = [1, 1]} : vector<4x256xf32> to vector<1x256xf32>
    %10 = vector.broadcast %8 : vector<6x1xf32> to vector<6x256xf32>
    %11 = vector.broadcast %9 : vector<1x256xf32> to vector<6x256xf32>
    %12 = arith.mulf %10, %11 : vector<6x256xf32>
    %13 = arith.addf %7, %12 : vector<6x256xf32>
    %14 = vector.extract_strided_slice %2 {offsets = [0, 2], sizes = [6, 1], strides = [1, 1]} : vector<6x4xf32> to vector<6x1xf32>
    %15 = vector.extract_strided_slice %1 {offsets = [2, 0], sizes = [1, 256], strides = [1, 1]} : vector<4x256xf32> to vector<1x256xf32>
    %16 = vector.broadcast %14 : vector<6x1xf32> to vector<6x256xf32>
    %17 = vector.broadcast %15 : vector<1x256xf32> to vector<6x256xf32>
    %18 = arith.mulf %16, %17 : vector<6x256xf32>
    %19 = arith.addf %13, %18 : vector<6x256xf32>
    %20 = vector.extract_strided_slice %2 {offsets = [0, 3], sizes = [6, 1], strides = [1, 1]} : vector<6x4xf32> to vector<6x1xf32>
    %21 = vector.extract_strided_slice %1 {offsets = [3, 0], sizes = [1, 256], strides = [1, 1]} : vector<4x256xf32> to vector<1x256xf32>
    %22 = vector.broadcast %20 : vector<6x1xf32> to vector<6x256xf32>
    %23 = vector.broadcast %21 : vector<1x256xf32> to vector<6x256xf32>
    %24 = arith.mulf %22, %23 : vector<6x256xf32>
    %25 = arith.addf %19, %24 : vector<6x256xf32>
    %c0_4 = arith.constant 0 : index
    %c0_5 = arith.constant 0 : index
    %c0_6 = arith.constant 0 : index
    %26 = vector.load %arg4[%c0_4, %c0_5, %c0_6] : memref<1x6x256xf32, #tpu.memory_space<vmem>>, vector<1x6x256xf32>
    %27 = vector.shape_cast %26 : vector<1x6x256xf32> to vector<6x256xf32>
    %28 = vector.shape_cast %25 : vector<6x256xf32> to vector<1x6x256xf32>
    tpu.vector_store %arg4[%c0_4, %c0_5, %c0_6], %28 {strides = array<i32>} : memref<1x6x256xf32, #tpu.memory_space<vmem>>, vector<1x6x256xf32>,
    return
  }
  func.func @transform_0(%arg0: i32, %arg1: i32) -> (i32, i32, i32) {
    %c0_i32 = arith.constant 0 : i32
    %c0_i32_0 = arith.constant 0 : i32
    return %arg0, %c0_i32, %arg1 : i32, i32, i32
  }
  func.func @transform_1(%arg0: i32, %arg1: i32) -> (i32, i32) {
    %c0_i32 = arith.constant 0 : i32
    %c0_i32_0 = arith.constant 0 : i32
    %c0_i32_1 = arith.constant 0 : i32
    return %c0_i32, %c0_i32_0 : i32, i32
  }
  func.func @transform_2(%arg0: i32, %arg1: i32) -> (i32, i32, i32) {
    %c0_i32 = arith.constant 0 : i32
    %c0_i32_0 = arith.constant 0 : i32
    return %arg0, %c0_i32, %arg1 : i32, i32, i32
  }
}

</mosaic_0001>

<bundles_post_ra>
// kernel: tpu_custom_call.1
= control target key start
LH: loop header
LB: loop body
LE: loop exit
PB: predicated region body
PF: predicated region fallthrough
CT: control target
= control target key end

     0   :  { %7 = vsyncpa [#allocation3], 0  ;;  %s702_s0 = inlined_call_operand.hbm [shape: f32[2,4,256], index: 0, kind: input, shape index: {}]   ;;  %s703_s1 = inlined_call_operand.vmem [shape: f32[6,4], index: 1, kind: input, shape index: {}]   ;;  %s704_s2 = inlined_call_operand.vmem [shape: f32[2,6,256], index: 2, kind: output, shape index: {}]  }
   0x1   :  { %9 = vsyncpa [#allocation3 + $0x1], 0  ;;  %s574_s9 = smov 0   ;;  %s576_s10 = smov 0  }
   0x2   :  { %s578_s11 = smov 0   ;;  %s580_s12 = smov 0  }
   0x3   :  { %s582_s13 = smov 0   ;;  %s584_s14 = smov 0  }
   0x4 LB: > { %s393_s15 = sadd.s32 4294967295, %s552_s14   ;;  %s27_s16 = sadd.s32 1, %s548_s13  ;;  %s552_s14 = sphi %s584_s14, %s15_s14   ;;  %s548_s13 = sphi %s582_s13, %s714_s13   ;;  %s544_s12 = sphi %s580_s12, %s713_s12   ;;  %s540_s11 = sphi %s578_s11, %s712_s11   ;;  %s536_s10 = sphi %s576_s10, %s711_s10   ;;  %s532_s9 = sphi %s574_s9, %s710_s9  }
   0x5   : > { %p29_p0 = scmp.ge.s32.totalorder %s27_s16, 2  ;;  %s36_s17 = sadd.s32 1, %s540_s11 }
   0x6   : > { %p43_p1 = scmp.ne.s32.totalorder %s540_s11, %s536_s10  ;;  %p44_p2 = scmp.eq.s32.totalorder %s552_s14, 0 }
   0x7   : > { %s716_s16 = smov (%p29_p0, %s27_s16), 0  ;;  %p49_p4 = scmp.ne.s32.totalorder %s536_s10, %s532_s9 }
   0x8   : > { %p610_p3 = por %p44_p2, %p43_p1  ;;  %s31_s19 = ssub.s32 %s548_s13, %s716_s16 }
   0x9   : > { %p50_p5 = scmp.eq.s32.totalorder %s393_s15, 0  ;;  %p34_p6 = scmp.eq.s32.totalorder %s31_s19, 0 }
   0xa   : > { %p414_p8 = scmp.lt.s32.totalorder %s552_s14, 2  ;;  %s125_s22 = sand.u32 1, %s540_s11  }
   0xb   : > { %p617_p7 = por %p50_p5, %p49_p4  ;;  %s406_s23 = sshll.u32 %s548_s13, 7 }
   0xc   : > { %s623_s21 = scalar_select %p34_p6, %s540_s11, %s36_s17  }
   0xd   : > { %s397_s24 = sshll.u32 %s125_s22, 3  ;;  %s630_s27 = scalar_lea.hbm %s702_s0, %s406_s23 }
   0xe   : > { %s129_s28 = scalar_lea.vmem [#allocation2], %s397_s24  ;;  %p634_p9 = pnand %p414_p8, %p610_p3 }
   0xf   : > { %s139_s29 = sshll.u32 %s129_s28, 4  ;;  %s126_s3 = scalar_lea.sflag [#allocation3], %s125_s22  ;;  %s638_s29 = int_to_ptr.vmem [resolvable:$true] %s139_s29 }
  0x10   : > { %s472_s4 = scalar_lea.hbm %s630_s27, 128  ;;  %p474_p13 = pneg %p634_p9 }
  0x11   : > { %p473_p12 = scmp.ne.s32.totalorder %s630_s27, %s472_s4  ;;  %s477_s7 = scalar_lea.hbm %s702_s0, 256 }
  0x12   : > { %p478_p2 = scmp.lt.u32.totalorder %s630_s27, %s702_s0  ;;  %p479_p3 = scmp.lt.u32.totalorder %s477_s7, %s472_s4 }
  0x13   : > { %p475_p0 = pnand %p474_p13, %p473_p12  ;;  %p481_p5 = scmp.lt.u32.totalorder %s472_s4, %s630_s27 }
  0x14   : > { %p480_p4 = por %p479_p3, %p478_p2 }
  0x15   : > { %p476_p1 = pneg %p475_p0 }
  0x16   : > { %p482_p6 = por %p481_p5, %p480_p4 }
  0x18   : > { %p483_p8 = pnand %p482_p6, %p476_p1 }
  0x1a   : > { %486 = shalt.err (!%p483_p8)
}
  0x1b   : > { %s487_s15 = scalar_lea.vmem %s638_s29, 128  ;;  %s554_s17 = smov [#allocation2]  }
  0x1c   : > { %p488_p12 = scmp.ne.s32.totalorder %s638_s29, %s487_s15  ;;  %s492_s18 = sshll.u32 %s554_s17, 4  ;;  %s493_s18 = int_to_ptr.vmem [resolvable:$false] %s492_s18 }
  0x1d   : > { %s494_s19 = scalar_lea.vmem %s493_s18, 256  ;;  %p495_p11 = scmp.lt.s32.totalorder %s638_s29, %s493_s18 }
  0x1e   : > { %p490_p0 = pnand %p488_p12, %p474_p13  ;;  %p496_p2 = scmp.lt.s32.totalorder %s494_s19, %s487_s15 }
  0x20   : > { %p491_p10 = pneg %p490_p0  ;;  %p497_p3 = por %p496_p2, %p495_p11 }
  0x22   : > { %p498_p4 = pnand %p497_p3, %p491_p10 }
  0x24   : > { %501 = shalt.err (!%p498_p4)
}
  0x25   : > { %413 = dma.hbm_to_vmem [thread:$0]  (!%p634_p9), %s630_s27, 128, %s638_s29, %s126_s3  }
  0x26   : > { %p708_p1 = scmp.lt.s32.totalorder %s552_s14, 3  ;;  %p709_p5 = scmp.ge.s32.totalorder %s552_s14, 1 }
  0x28   : > { %p145_p13 = pnand %p709_p5, %p708_p1 }
  0x29   : > { %s150_s22 = sand.u32 (!%p145_p13), 1, %s536_s10  }
  0x2a   : > { %148 = sbr.rel (%p145_p13) target bundleno = 194 (0xc2), region = 28  ;;  %s401_s23 = sshll.u32 (!%p145_p13), %s150_s22, 3 }
  0x2b   : > { %s151_s24 = scalar_lea.sflag (!%p145_p13), [#allocation3], %s150_s22  ;;  %s154_s25 = scalar_lea.vmem (!%p145_p13), [#allocation2], %s401_s23 }
  0x31   : > { %527 = dma.done.wait (%p617_p7), %s151_s24, 128  }
  0x32   : > { %529 = vsyncadd (%p617_p7), %s151_s24, 4294967168  ;;  %v555_v0 = vmov 0   ;;  %v556_v1 = vmov 2   ;;  %v191_v2 = vld [vmem:[%s703_s1] sm:$0x3f]  ;;  %v557_v3 = vmov 1   ;;  %v198_v5 = vlaneseq }
  0x33   : > { %467 = vset.pattern.permute.xlu0 %v555_v0  ;;  %469 = vset.pattern.permute.xlu1 %v556_v1  ;;  %v558_v4 = vmov 3   ;;  %v190_v11 = vld [vmem:[%s154_s25] sm:$0xff]  ;;  %p181_p7 = scmp.lt.s32.totalorder %s544_s12, 1 }
  0x34   : > { %194 = vperm.xlu0 %467, %v191_v2   ;;  %245 = vperm.xlu1 %469, %v191_v2   ;;  %v199_v6 = vshrl.u32 %v198_v5, 7 }
  0x35   : > { %s718_s12 = smov (!%p181_p7, %s544_s12), 1 }
  0x36   : > { %v200_v7 = vsub.s32 0, %v199_v6  ;;  %v204_v8 = vsub.s32 4, %v199_v6  ;;  %v224_v9 = vsub.s32 1, %v199_v6  ;;  %v228_v10 = vsub.s32 5, %v199_v6  ;;  %s407_s20 = sshll.u32 %s718_s12, 4 }
  0x37   : > { %v250_v12 = vsub.s32 2, %v199_v6  ;;  %v254_v13 = vsub.s32 6, %v199_v6  ;;  %v276_v14 = vsub.s32 3, %v199_v6  ;;  %v280_v15 = vsub.s32 7, %v199_v6  ;;  %s188_s30 = scalar_lea.vmem %s704_s2, %s407_s20 }
  0x38   : > { %468 = vset.pattern.permute.xlu0 %v557_v3  ;;  %470 = vset.pattern.permute.xlu1 %v558_v4  ;;  %v201_v16 = vrot.slane %v190_v11, %v200_v7  ;;  %v205_v17 = vrot.slane %v190_v11, %v204_v8  ;;  %v225_v18 = vrot.slane %v190_v11, %v224_v9 }
  0x39   : > { %219 = vperm.xlu0 %468, %v191_v2   ;;  %271 = vperm.xlu1 %470, %v191_v2   ;;  %v229_v19 = vrot.slane %v190_v11, %v228_v10  ;;  %v251_v20 = vrot.slane %v190_v11, %v250_v12  ;;  %v255_v21 = vrot.slane %v190_v11, %v254_v13 }
  0x3a   : > { %v277_v24 = vrot.slane %v190_v11, %v276_v14  ;;  %v281_v25 = vrot.slane %v190_v11, %v280_v15  ;;  %v211_v26 = vrot.slane %v201_v16, %v200_v7  ;;  %v215_v27 = vrot.slane %v205_v17, %v200_v7 }
  0x3b   : > { %v235_v28 = vrot.slane %v225_v18, %v224_v9  ;;  %v239_v29 = vrot.slane %v229_v19, %v224_v9  ;;  %v261_v30 = vrot.slane %v251_v20, %v250_v12  ;;  %v265_v31 = vrot.slane %v255_v21, %v250_v12 }
  0x3c   : > { %v287_v32 = vrot.slane %v277_v24, %v276_v14  ;;  %v291_v33 = vrot.slane %v281_v25, %v276_v14 }
  0x3d   : > { %471 = vset.pattern.permute.xlu0 %v558_v4 }
  0xb3   : > { %v195_v22 = vpop.permute.xlu0 %194  ;;  %v246_v23 = vpop.permute.xlu1 %245 }
  0xb4   : > { %v216_v36 = vmul.f32 %v211_v26, %v195_v22  ;;  %v217_v37 = vmul.f32 %v215_v27, %v195_v22  ;;  %v266_v40 = vmul.f32 %v261_v30, %v246_v23  ;;  %v267_v41 = vmul.f32 %v265_v31, %v246_v23 }
  0xb8   : > { %v220_v34 = vpop.permute.xlu0 %219  ;;  %v272_v35 = vpop.permute.xlu1 %271 }
  0xb9   : > { %v240_v38 = vmul.f32 %v235_v28, %v220_v34  ;;  %v241_v39 = vmul.f32 %v239_v29, %v220_v34  ;;  %v292_v44 = vmul.f32 %v287_v32, %v272_v35  ;;  %v293_v45 = vmul.f32 %v291_v33, %v272_v35 }
  0xbb   : > { %v242_v42 = vadd.f32 %v240_v38, %v216_v36  ;;  %v243_v43 = vadd.f32 %v241_v39, %v217_v37 }
  0xbd   : > { %v268_v46 = vadd.f32 %v266_v40, %v242_v42  ;;  %v269_v47 = vadd.f32 %v267_v41, %v243_v43 }
  0xbf   : > { %v294_v48 = vadd.f32 %v292_v44, %v268_v46  ;;  %v295_v49 = vadd.f32 %v293_v45, %v269_v47 }
  0xc1   : > { %296 = vst [vmem:[%s188_s30] sm:$0x3f] %v294_v48  ;;  %297 = vst [vmem:[%s188_s30 + $0x8] sm:$0x3f] %v295_v49 }
  0xc2 PF: > { %s15_s14 = sadd.s32 1, %s552_s14   ;;  %s710_s9 = smov %s536_s10 }
  0xc3   : > { %p12_p9 = scmp.ge.s32.totalorder %s15_s14, 4   ;;  %s711_s10 = smov %s540_s11 }
  0xc4   : > { %s712_s11 = smov %s623_s21  ;;  %s713_s12 = smov %s548_s13 }
  0xc5   : > { %s714_s13 = smov %s716_s16  ;;  %14 = sbr.rel (!%p12_p9) target bundleno = 4 (0x4), region = 68 }
  0xcc   :  { %328 = vsyncpa [#allocation3], 1 }
  0xcd   :  { %330 = vsyncpa [#allocation3 + $0x1], 1 }

</bundles_post_ra>
